<compile_context>
chip_gen: v7x
topology: tpu7x:2x2x1
jax: 0.10.0
libtpu: 0.0.40
codegen_flags: <defaults>
</compile_context>

<pallas_src>
import jax
import jax.numpy as jnp
from jax.experimental import pallas as pl
from jax.experimental.pallas import tpu as pltpu

_TARGET_BLOCK_BYTES = 8 * 1024 * 1024   # x-block target (~32-34 MiB VMEM double-buffered)
_MIN_VMEM_LIMIT = 32 * 1024 * 1024
_VMEM_HEADROOM = 8 * 1024 * 1024
_FALLBACK_VMEM_CAP = 64 * 1024 * 1024   # v7x per-TC physical VMEM (most restrictive gen)


def _add_pe_kernel(x_ref, pe_ref, o_ref):
    # x_ref: (bt, ts, tf); pe_ref: (1, ts, tf) — broadcasts over the batch dim.
    o_ref[...] = x_ref[...] + pe_ref[...]


def _vmem_capacity_bytes() -> int:
    try:
        cap = getattr(pltpu.get_tpu_info(), "vmem_capacity_bytes", None)
        if cap:
            return int(cap)
    except Exception:
        pass
    return _FALLBACK_VMEM_CAP


def positional_embedding_learned(x, pe_table, *, donate_x: bool = False):
    """x: (B, S, F); pe_table: (L, F) with L >= S. Returns x + pe_table[:S].

    donate_x=True adds input_output_aliases={0: 0}; only beneficial when the
    caller actually donates x (e.g. jax.jit(..., donate_argnums=0)).
    """
    B, S, F = x.shape
    dtype = x.dtype
    itemsize = jnp.dtype(dtype).itemsize
    sublane = {4: 8, 2: 16, 1: 32}.get(itemsize, 8)

    # pe(positions)[0:S], cast to the activation dtype (note: slight deviation
    # from PyTorch type promotion for mixed-dtype callers; keeps HBM traffic
    # at the activation width).
    pe_slice = pe_table[:S].astype(dtype)[None]          # (1, S, F)

    # ---- Feature tiling: keep full F (block last dim == full array dim is
    # layout-legal; tail stores are masked vst) unless a single (sublane, F)
    # slab already exceeds the block target — then tile F in 128-lane chunks.
    if F * itemsize * sublane > _TARGET_BLOCK_BYTES and F >= 256:
        tf = max(128, (_TARGET_BLOCK_BYTES // (itemsize * sublane)) // 128 * 128)
        tf = int(min(tf, (F // 128) * 128))
    else:
        tf = F

    # ---- Sequence / batch tiling toward the block target. Prefer full-S slabs
    # and grow the batch tile; only tile S when one (1, S, tf) slab is too big.
    row_bytes = S * tf * itemsize
    if row_bytes <= _TARGET_BLOCK_BYTES:
        bt = int(min(B, max(1, _TARGET_BLOCK_BYTES // row_bytes)))
        ts = S
    else:
        bt = 1
        ts = max(sublane, (_TARGET_BLOCK_BYTES // (tf * itemsize)) // sublane * sublane)
        ts = int(min(ts, S))

    nf, ns, nb = pl.cdiv(F, tf), pl.cdiv(S, ts), pl.cdiv(B, bt)

    # ---- Megacore: guarantee >= 2 grid steps on a "parallel" axis so v7x's
    # second TensorCore has work when the whole problem fits in one block.
    if nf * ns * nb == 1:
        if B >= 2:
            bt = (B + 1) // 2
            nb = pl.cdiv(B, bt)
        elif S >= 2 * sublane:
            ts = int(min(((pl.cdiv(S, 2) + sublane - 1) // sublane) * sublane, S))
            ns = pl.cdiv(S, ts)

    # F-tiles outer, S-tiles middle, batch-tiles INNER: the pe block index is
    # constant across the innermost axis, so the pipeliner does not re-DMA pe
    # per batch tile.
    grid = (nf, ns, nb)

    # ---- VMEM budget: x + out double-buffered, pe double-buffered (tiny).
    # Capacity-derived cap (64 MiB v7x / 128 MiB v5e-v6e) with headroom, and
    # never below the actual need.
    x_blk = bt * ts * tf * itemsize
    pe_blk = ts * tf * itemsize
    need = 4 * x_blk + 2 * pe_blk
    vmem_cap = _vmem_capacity_bytes()
    vmem_limit = max(min(2 * need, vmem_cap - _VMEM_HEADROOM), need, _MIN_VMEM_LIMIT)
    vmem_limit = int(min(vmem_limit, vmem_cap))

    cost = pl.CostEstimate(
        flops=B * S * F,
        transcendentals=0,
        bytes_accessed=(2 * B * S + S) * F * itemsize,
    )

    extra = {"input_output_aliases": {0: 0}} if donate_x else {}

    return pl.pallas_call(
        _add_pe_kernel,
        out_shape=jax.ShapeDtypeStruct((B, S, F), dtype),
        grid_spec=pltpu.PrefetchScalarGridSpec(
            num_scalar_prefetch=0,
            grid=grid,
            in_specs=[
                pl.BlockSpec((bt, ts, tf), lambda f, s, b: (b, s, f)),
                pl.BlockSpec((1, ts, tf), lambda f, s, b: (0, s, f)),
            ],
            out_specs=pl.BlockSpec((bt, ts, tf), lambda f, s, b: (b, s, f)),
        ),
        compiler_params=pltpu.CompilerParams(
            dimension_semantics=("parallel", "parallel", "parallel"),
            vmem_limit_bytes=vmem_limit,
        ),
        cost_estimate=cost,
        **extra,
    )(x, pe_slice)


if __name__ == "__main__":
    # Small shapes consistent with the module: batch=2, seq=8, features=128,
    # max_seq_len=16.
    B, S, F, L = 2, 8, 128, 16

    key = jax.random.PRNGKey(0)
    kx, kpe = jax.random.split(key)

    x = jax.random.normal(kx, (B, S, F), dtype=jnp.float32)
    # nn.Embedding default init is N(0, 1); deterministic synthetic weights.
    pe_table = jax.random.normal(kpe, (L, F), dtype=jnp.float32)

    ref = x + pe_table[None, :S]

    # Default path (no aliasing).
    out = positional_embedding_learned(x, pe_table)
    out = jax.block_until_ready(out)
    assert out.shape == (B, S, F)
    assert jnp.allclose(out, ref, atol=1e-6), "mismatch vs reference"

    # In-place path: donate a private copy of x at the jit boundary so the
    # kernel's input_output_aliases={0: 0} can actually take effect.
    aliased_fn = jax.jit(
        lambda xx, pe: positional_embedding_learned(xx, pe, donate_x=True),
        donate_argnums=(0,),
    )
    out2 = aliased_fn(x + 0.0, pe_table)
    out2 = jax.block_until_ready(out2)
    assert jnp.allclose(out2, ref, atol=1e-6), "mismatch vs reference (aliased)"

    print("KERNEL_OK")
</pallas_src>

<mosaic_0001>
module attributes {stable_mosaic.version = 11 : i64} {
  func.func @_add_pe_kernel(%arg0: i32, %arg1: i32, %arg2: i32, %arg3: memref<1x8x128xf32, #tpu.memory_space<vmem>>, %arg4: memref<1x8x128xf32, #tpu.memory_space<vmem>>, %arg5: memref<1x8x128xf32, #tpu.memory_space<vmem>>) attributes {dimension_semantics = [#tpu.dimension_semantics<parallel>, #tpu.dimension_semantics<parallel>, #tpu.dimension_semantics<parallel>], iteration_bounds = array<i64: 1, 1, 2>, scalar_prefetch = 0 : i64, scratch_operands = 0 : i64, tpu.core_type = #tpu.core_type<tc>, window_params = [{transform_indices = @transform_0, window_bounds = array<i64: 1, 8, 128>}, {transform_indices = @transform_1, window_bounds = array<i64: 1, 8, 128>}, {transform_indices = @transform_2, window_bounds = array<i64: 1, 8, 128>}]} {
    %c0 = arith.constant 0 : index
    %c0_0 = arith.constant 0 : index
    %c0_1 = arith.constant 0 : index
    %0 = vector.load %arg3[%c0, %c0_0, %c0_1] : memref<1x8x128xf32, #tpu.memory_space<vmem>>, vector<1x8x128xf32>
    %c0_2 = arith.constant 0 : index
    %c0_3 = arith.constant 0 : index
    %c0_4 = arith.constant 0 : index
    %1 = vector.load %arg4[%c0_2, %c0_3, %c0_4] : memref<1x8x128xf32, #tpu.memory_space<vmem>>, vector<1x8x128xf32>
    %2 = arith.addf %0, %1 : vector<1x8x128xf32>
    %c0_5 = arith.constant 0 : index
    %c0_6 = arith.constant 0 : index
    %c0_7 = arith.constant 0 : index
    %3 = vector.load %arg5[%c0_5, %c0_6, %c0_7] : memref<1x8x128xf32, #tpu.memory_space<vmem>>, vector<1x8x128xf32>
    tpu.vector_store %arg5[%c0_5, %c0_6, %c0_7], %2 {strides = array<i32>} : memref<1x8x128xf32, #tpu.memory_space<vmem>>, vector<1x8x128xf32>,
    return
  }
  func.func @transform_0(%arg0: i32, %arg1: i32, %arg2: i32) -> (i32, i32, i32) {
    %c0_i32 = arith.constant 0 : i32
    return %arg2, %arg1, %arg0 : i32, i32, i32
  }
  func.func @transform_1(%arg0: i32, %arg1: i32, %arg2: i32) -> (i32, i32, i32) {
    %c0_i32 = arith.constant 0 : i32
    %c0_i32_0 = arith.constant 0 : i32
    return %c0_i32, %arg1, %arg0 : i32, i32, i32
  }
  func.func @transform_2(%arg0: i32, %arg1: i32, %arg2: i32) -> (i32, i32, i32) {
    %c0_i32 = arith.constant 0 : i32
    return %arg2, %arg1, %arg0 : i32, i32, i32
  }
}

</mosaic_0001>

<bundles_post_ra>
// kernel: tpu_custom_call.1
= control target key start
LH: loop header
LB: loop body
LE: loop exit
PB: predicated region body
PF: predicated region fallthrough
CT: control target
= control target key end

     0   :  { %7 = vsyncpa [#allocation3], 0  ;;  %s797_s0 = inlined_call_operand.hbm [shape: f32[2,8,128], index: 0, kind: input, shape index: {}]   ;;  %s798_s1 = inlined_call_operand.hbm [shape: f32[1,8,128], index: 1, kind: input, shape index: {}]   ;;  %s799_s2 = inlined_call_operand.hbm [shape: f32[2,8,128], index: 2, kind: output, shape index: {}]  }
   0x1   :  { %9 = vsyncpa [#allocation3 + $0x1], 0 }
   0x2   :  { %10 = vsyncpa [#allocation6], 0 }
   0x3   :  { %11 = vsyncpa [#allocation4], 0 }
   0x4   :  { %13 = vsyncpa [#allocation4 + $0x1], 0  ;;  %s581_s9 = smov 0   ;;  %s583_s10 = smov 0  }
   0x5   :  { %s585_s11 = smov 0   ;;  %s587_s12 = smov 0  }
   0x6   :  { %s589_s13 = smov 0   ;;  %s591_s14 = smov 0  }
   0x7 LB: > { %s329_s15 = sadd.s32 4294967295, %s561_s14   ;;  %s330_s16 = sadd.s32 4294967294, %s561_s14   ;;  %s561_s14 = sphi %s591_s14, %s19_s14   ;;  %s557_s13 = sphi %s589_s13, %s824_s13   ;;  %s553_s12 = sphi %s587_s12, %s823_s12   ;;  %s549_s11 = sphi %s585_s11, %s822_s11   ;;  %s545_s10 = sphi %s583_s10, %s821_s10   ;;  %s541_s9 = sphi %s581_s9, %s820_s9  }
   0x8   : > { %p62_p0 = scmp.ne.s32.totalorder %s545_s10, %s541_s9  ;;  %p615_p1 = scmp.eq.s32.totalorder %s329_s15, 0 }
   0x9   : > { %p619_p2 = scmp.eq.s32.totalorder %s329_s15, 1  ;;  %p124_p3 = scmp.eq.s32.totalorder %s330_s16, 1 }
   0xa   : > { %s804_s17 = scalar_select %p615_p1, 1, 0 }
   0xb   : > { %s805_s18 = scalar_select %p619_p2, 1, 0 }
   0xc   : > { %p625_p4 = por %p615_p1, %p62_p0  ;;  %p331_p5 = scmp.ge.s32.totalorder %s561_s14, 1 }
   0xd   : > { %p630_p6 = por %p124_p3, %p62_p0  ;;  %p131_p7 = scmp.lt.s32.totalorder %s561_s14, 3 }
   0xe   : > { %s806_s19 = scalar_select %p625_p4, 1, 0 }
   0xf   : > { %s807_s20 = scalar_select %p630_p6, 1, 0 }
  0x10   : > { %p635_p8 = pnand %p331_p5, %p131_p7  ;;  %s563_s22 = smov [#allocation5]  }
  0x11   : > { %s147_s23 = sshll.u32 %s563_s22, 4  ;;  %s31_s25 = sadd.s32 1, %s557_s13  ;;  %s148_s23 = int_to_ptr.vmem [resolvable:$true] %s147_s23 }
  0x12   : > { %s808_s21 = scalar_select %p635_p8, 1, 0 }
  0x13   : > { %p352_p10 = pneg %p635_p8  ;;  %s49_s26 = sadd.s32 1, %s549_s11 }
  0x14   : > { %p650_p12 = scmp.ge.s32.totalorder %s31_s25, 2  ;;  %s417_s30 = scalar_lea.hbm %s798_s1, 128 }
  0x15   : > { %p644_p11 = pnand %p352_p10, %p615_p1  ;;  %p418_p13 = scmp.ne.s32.totalorder %s798_s1, %s417_s30 }
  0x16   : > { %s810_s27 = scalar_select %p650_p12, 1, 0 }
  0x17   : > { %p419_p0 = pneg %p644_p11  ;;  %p424_p7 = scmp.lt.u32.totalorder %s417_s30, %s798_s1 }
  0x19   : > { %p420_p3 = pnand %p419_p0, %p418_p13 }
  0x1b   : > { %p421_p5 = pneg %p420_p3 }
  0x1d   : > { %p426_p10 = pnand %p424_p7, %p421_p5 }
  0x1f   : > { %429 = shalt.err (!%p426_p10)
}
  0x20   : > { %s430_s7 = scalar_lea.vmem %s148_s23, 128  ;;  %p438_p4 = scmp.lt.s32.totalorder %s148_s23, %s148_s23 }
  0x21   : > { %p431_p9 = scmp.ne.s32.totalorder %s148_s23, %s430_s7  ;;  %p439_p8 = scmp.lt.s32.totalorder %s430_s7, %s430_s7 }
  0x23   : > { %p433_p6 = pnand %p431_p9, %p419_p0  ;;  %p440_p2 = por %p439_p8, %p438_p4 }
  0x25   : > { %p434_p1 = pneg %p433_p6 }
  0x27   : > { %p441_p12 = pnand %p440_p2, %p434_p1 }
  0x29   : > { %444 = shalt.err (!%p441_p12)
}
  0x2a   : > { %355 = dma.hbm_to_vmem [thread:$0]  (!%p644_p11), %s798_s1, 128, %s148_s23, [#allocation6]  }
  0x2b   : > { %p811_p4 = scmp.ne.s32.totalorder %s810_s27, 0  ;;  %p56_p1 = scmp.ne.s32.totalorder %s549_s11, %s545_s10 }
  0x2c   : > { %p57_p2 = scmp.eq.s32.totalorder %s561_s14, 0  ;;  %p365_p6 = scmp.lt.s32.totalorder %s561_s14, 2 }
  0x2d   : > { %s826_s25 = smov (%p811_p4, %s31_s25), 0  ;;  %p812_p12 = scmp.ne.s32.totalorder %s805_s18, 0 }
  0x2e   : > { %s42_s16 = ssub.s32 %s557_s13, %s826_s25  ;;  %p58_p9 = por %p57_p2, %p56_p1 }
  0x2f   : > { %p47_p8 = scmp.eq.s32.totalorder %s42_s16, 0  ;;  %p682_p13 = por %p812_p12, %p56_p1 }
  0x30   : > { %s158_s24 = sand.u32 1, %s549_s11   ;;  %s335_s27 = sshll.u32 %s557_s13, 7 }
  0x31   : > { %s690_s28 = scalar_select %p47_p8, %s549_s11, %s49_s26  }
  0x32   : > { %s334_s23 = sshll.u32 %s158_s24, 3  ;;  %s696_s3 = scalar_lea.hbm %s797_s0, %s335_s27 }
  0x33   : > { %s162_s18 = scalar_lea.vmem [#allocation2], %s334_s23  ;;  %p700_p11 = pnand %p365_p6, %p58_p9 }
  0x34   : > { %s171_s4 = sshll.u32 %s162_s18, 4  ;;  %s159_s26 = scalar_lea.sflag [#allocation3], %s158_s24  ;;  %s698_s4 = int_to_ptr.vmem [resolvable:$true] %s171_s4 }
  0x35   : > { %s445_s6 = scalar_lea.hbm %s696_s3, 128  ;;  %p447_p3 = pneg %p700_p11 }
  0x36   : > { %p446_p0 = scmp.ne.s32.totalorder %s696_s3, %s445_s6  ;;  %s450_s15 = scalar_lea.hbm %s797_s0, 256 }
  0x37   : > { %p451_p10 = scmp.lt.u32.totalorder %s696_s3, %s797_s0  ;;  %p452_p4 = scmp.lt.u32.totalorder %s450_s15, %s445_s6 }
  0x38   : > { %p448_p5 = pnand %p447_p3, %p446_p0  ;;  %p454_p2 = scmp.lt.u32.totalorder %s445_s6, %s696_s3 }
  0x39   : > { %p453_p1 = por %p452_p4, %p451_p10 }
  0x3a   : > { %p449_p7 = pneg %p448_p5 }
  0x3b   : > { %p455_p6 = por %p454_p2, %p453_p1 }
  0x3d   : > { %p456_p8 = pnand %p455_p6, %p449_p7 }
  0x3f   : > { %459 = shalt.err (!%p456_p8)
}
  0x40   : > { %s460_s24 = scalar_lea.vmem %s698_s4, 128  ;;  %s564_s27 = smov [#allocation2]  }
  0x41   : > { %p461_p9 = scmp.ne.s32.totalorder %s698_s4, %s460_s24  ;;  %s465_s29 = sshll.u32 %s564_s27, 4  ;;  %s466_s29 = int_to_ptr.vmem [resolvable:$false] %s465_s29 }
  0x42   : > { %s467_s30 = scalar_lea.vmem %s466_s29, 256  ;;  %p468_p5 = scmp.lt.s32.totalorder %s698_s4, %s466_s29 }
  0x43   : > { %p463_p12 = pnand %p461_p9, %p447_p3  ;;  %p469_p10 = scmp.lt.s32.totalorder %s467_s30, %s460_s24 }
  0x45   : > { %p464_p0 = pneg %p463_p12  ;;  %p470_p4 = por %p469_p10, %p468_p5 }
  0x47   : > { %p471_p1 = pnand %p470_p4, %p464_p0 }
  0x49   : > { %474 = shalt.err (!%p471_p1)
}
  0x4a   : > { %359 = dma.hbm_to_vmem [thread:$0]  (!%p700_p11), %s696_s3, 128, %s698_s4, %s159_s26  }
  0x4b   : > { %p815_p7 = scmp.ne.s32.totalorder %s808_s21, 0 }
  0x4c   : > { %s732_s18 = sand.u32 (!%p815_p7), 1, %s545_s10   ;;  %p816_p3 = scmp.ne.s32.totalorder (!%p815_p7), %s806_s19, 0 }
  0x4d   : > { %180 = sbr.rel (%p815_p7) target bundleno = 113 (0x71), region = 28  ;;  %s337_s6 = sshll.u32 (!%p815_p7), %s732_s18, 3 }
  0x4e   : > { %s183_s7 = scalar_lea.sflag (!%p815_p7), [#allocation3], %s732_s18  ;;  %s186_s8 = scalar_lea.vmem (!%p815_p7), [#allocation2], %s337_s6 }
  0x54   : > { %528 = dma.done.wait (%p816_p3), %s183_s7, 128  }
  0x55   : > { %530 = vsyncadd (%p816_p3), %s183_s7, 4294967168  ;;  %p817_p2 = scmp.ne.s32.totalorder %s804_s17, 0 }
  0x57   : > { %532 = dma.done.wait (%p817_p2), [#allocation6], 128  }
  0x58   : > { %534 = vsyncadd (%p817_p2), [#allocation6], 4294967168  ;;  %s210_s21 = scalar_lea.vmem [#allocation7], %s337_s6  ;;  %s341_s4 = sshll.u32 %s553_s12, 7  ;;  %v211_v0 = vld [vmem:[%s186_s8] sm:$0xff]  ;;  %v212_v1 = vld [vmem:[#allocation5] sm:$0xff] }
  0x59   : > { %s231_s3 = sshll.u32 %s210_s21, 4  ;;  %v213_v2 = vadd.f32 %v212_v1, %v211_v0  ;;  %s750_s26 = scalar_lea.hbm %s799_s2, %s341_s4  ;;  %s745_s3 = int_to_ptr.vmem [resolvable:$true] %s231_s3 }
  0x5a   : > { %s216_s17 = scalar_lea.sflag [#allocation4], %s732_s18  ;;  %s475_s15 = scalar_lea.vmem %s745_s3, 128 }
  0x5b   : > { %214 = vst [vmem:[%s210_s21] sm:$0xff] %v213_v2  ;;  %p476_p11 = scmp.ne.s32.totalorder %s745_s3, %s475_s15  ;;  %s565_s12 = smov [#allocation7]  }
  0x5c   : > { %s479_s16 = sshll.u32 %s565_s12, 4  ;;  %s480_s16 = int_to_ptr.vmem [resolvable:$false] %s479_s16 }
  0x5d   : > { %p477_p6 = pnand %p476_p11, %p682_p13  ;;  %s481_s23 = scalar_lea.vmem %s480_s16, 256 }
  0x5e   : > { %p482_p9 = scmp.lt.s32.totalorder %s745_s3, %s480_s16  ;;  %p483_p12 = scmp.lt.s32.totalorder %s481_s23, %s475_s15 }
  0x5f   : > { %p478_p8 = pneg %p477_p6 }
  0x60   : > { %p484_p0 = por %p483_p12, %p482_p9 }
  0x62   : > { %p485_p5 = pnand %p484_p0, %p478_p8 }
  0x64   : > { %488 = shalt.err (!%p485_p5)
}
  0x65   : > { %s489_s24 = scalar_lea.hbm %s750_s26, 128  ;;  %s493_s30 = scalar_lea.hbm %s799_s2, 256 }
  0x66   : > { %p490_p10 = scmp.ne.s32.totalorder %s750_s26, %s489_s24  ;;  %p494_p7 = scmp.lt.u32.totalorder %s750_s26, %s799_s2 }
  0x67   : > { %p495_p3 = scmp.lt.u32.totalorder %s493_s30, %s489_s24  ;;  %p497_p11 = scmp.lt.u32.totalorder %s489_s24, %s750_s26 }
  0x68   : > { %p491_p4 = pnand %p490_p10, %p682_p13 }
  0x69   : > { %p496_p2 = por %p495_p3, %p494_p7 }
  0x6a   : > { %p492_p1 = pneg %p491_p4 }
  0x6b   : > { %p498_p6 = por %p497_p11, %p496_p2 }
  0x6d   : > { %p499_p8 = pnand %p498_p6, %p492_p1 }
  0x6f   : > { %502 = shalt.err (!%p499_p8)
}
  0x70   : > { %350 = dma.vmem_to_hbm [thread:$0]  (%p682_p13), %s745_s3, 128, %s750_s26, %s216_s17  }
  0x71 PF: > { %s243_s7 = sand.u32 1, %s541_s9   ;;  %p818_p9 = scmp.ne.s32.totalorder %s807_s20, 0 }
  0x72   : > { %p819_p12 = scmp.ge.s32.totalorder %s561_s14, 2  ;;  %s244_s8 = scalar_lea.sflag [#allocation4], %s243_s7 }
  0x74   : > { %p361_p0 = pnand %p819_p12, %p818_p9 }
  0x76   : > { %536 = dma.done.wait (!%p361_p0), %s244_s8, 128  }
  0x77   : > { %538 = vsyncadd (!%p361_p0), %s244_s8, 4294967168  ;;  %s19_s14 = sadd.s32 1, %s561_s14   ;;  %s820_s9 = smov %s545_s10 }
  0x78   : > { %p16_p5 = scmp.ge.s32.totalorder %s19_s14, 4   ;;  %s821_s10 = smov %s549_s11 }
  0x79   : > { %s822_s11 = smov %s690_s28  ;;  %s823_s12 = smov %s557_s13 }
  0x7a   : > { %s824_s13 = smov %s826_s25  ;;  %18 = sbr.rel (!%p16_p5) target bundleno = 7 (0x7), region = 78 }
  0x81   :  { %249 = vsyncpa [#allocation3], 1 }
  0x82   :  { %251 = vsyncpa [#allocation3 + $0x1], 1 }
  0x83   :  { %252 = vsyncpa [#allocation6], 1 }
  0x84   :  { %253 = vsyncpa [#allocation4], 1 }
  0x85   :  { %255 = vsyncpa [#allocation4 + $0x1], 1 }

</bundles_post_ra>
